<compile_context>
chip_gen: v7x
topology: tpu7x:2x2x1
jax: 0.10.0
libtpu: 0.0.40
codegen_flags: <defaults>
</compile_context>

<pallas_src>
import jax
import jax.numpy as jnp
from jax.experimental import pallas as pl
from jax.experimental.pallas import tpu as pltpu  # noqa: F401  (TPU backend)


def _decoder_kernel(x_ref, h_ref, c_ref, wg_ref, bg_ref, wfc_ref, bfc_ref, y_ref):
    # x_ref/h_ref/c_ref: (1, B, H); wg_ref: (2H, 4H); bg_ref: (1, 4H)
    # wfc_ref: (H, O); bfc_ref: (1, O); y_ref: (B, O)
    x = x_ref[0]                      # (B, H)  -- last time step (via BlockSpec)
    h = h_ref[0]                      # (B, H)
    c = c_ref[0]                      # (B, H)
    H = h.shape[-1]

    # One fused MXU pass: (B, 2H) @ (2H, 4H) + bias.
    xh = jnp.concatenate([x, h], axis=-1)                         # (B, 2H)
    gates = (jnp.dot(xh, wg_ref[...], preferred_element_type=jnp.float32)
             + bg_ref[...])                                       # (B, 4H)

    # PyTorch LSTM gate order: input, forget, cell(g), output.
    i_g = jax.nn.sigmoid(gates[:, 0 * H:1 * H])
    f_g = jax.nn.sigmoid(gates[:, 1 * H:2 * H])
    g_g = jnp.tanh(gates[:, 2 * H:3 * H])
    o_g = jax.nn.sigmoid(gates[:, 3 * H:4 * H])

    c_new = f_g * c + i_g * g_g
    h_new = o_g * jnp.tanh(c_new)

    # Final Linear: (B, H) @ (H, O) + bias.
    y_ref[...] = (jnp.dot(h_new, wfc_ref[...], preferred_element_type=jnp.float32)
                  + bfc_ref[...])


def decoder_forward(input_seq, hidden_state, cell_state, fused_params):
    """input_seq: (S, B, H); hidden_state, cell_state: (1, B, H) -> (1, B, O)."""
    S, B, H = input_seq.shape
    w_gates = fused_params["w_gates"]     # (2H, 4H)
    b_gates = fused_params["b_gates"]     # (1, 4H)
    w_fc_t = fused_params["w_fc_t"]       # (H, O)
    b_fc = fused_params["b_fc"]           # (1, O)
    O = w_fc_t.shape[1]

    y = pl.pallas_call(
        _decoder_kernel,
        out_shape=jax.ShapeDtypeStruct((B, O), jnp.float32),
        grid=(1,),
        in_specs=[
            # Only the last time step of input_seq is DMA'd into VMEM.
            pl.BlockSpec((1, B, H), lambda i: (S - 1, 0, 0)),
            pl.BlockSpec((1, B, H), lambda i: (0, 0, 0)),
            pl.BlockSpec((1, B, H), lambda i: (0, 0, 0)),
            pl.BlockSpec((2 * H, 4 * H), lambda i: (0, 0)),
            pl.BlockSpec((1, 4 * H), lambda i: (0, 0)),
            pl.BlockSpec((H, O), lambda i: (0, 0)),
            pl.BlockSpec((1, O), lambda i: (0, 0)),
        ],
        out_specs=pl.BlockSpec((B, O), lambda i: (0, 0)),
    )(input_seq, hidden_state, cell_state, w_gates, b_gates, w_fc_t, b_fc)

    return y[None, :, :]                  # (1, B, O)


def fuse_params(params):
    """One-time parameter prep (kept OUT of the per-call path):
    pre-transpose, stack the two gate weights, and fold the two biases."""
    H = params["w_hh"].shape[1]
    O = params["w_fc"].shape[0]
    w_gates = jnp.concatenate([params["w_ih"].T, params["w_hh"].T], axis=0)  # (2H, 4H)
    b_gates = (params["b_ih"] + params["b_hh"]).reshape(1, 4 * H)            # (1, 4H)
    return {
        "w_gates": w_gates,
        "b_gates": b_gates,
        "w_fc_t": params["w_fc"].T,                                          # (H, O)
        "b_fc": params["b_fc"].reshape(1, O),                                # (1, O)
    }


def init_params(key, hidden_size, output_size):
    """PyTorch-style uniform(-1/sqrt(H), 1/sqrt(H)) init, PyTorch layouts."""
    ks = jax.random.split(key, 6)
    k = 1.0 / jnp.sqrt(hidden_size)
    u = lambda kk, shape: jax.random.uniform(kk, shape, jnp.float32, -k, k)
    return {
        "w_ih": u(ks[0], (4 * hidden_size, hidden_size)),
        "w_hh": u(ks[1], (4 * hidden_size, hidden_size)),
        "b_ih": u(ks[2], (4 * hidden_size,)),
        "b_hh": u(ks[3], (4 * hidden_size,)),
        "w_fc": u(ks[4], (output_size, hidden_size)),
        "b_fc": u(ks[5], (output_size,)),
    }


def _reference(input_seq, hidden_state, cell_state, params):
    """Pure-JAX reference mirroring nn.LSTM(single step) + nn.Linear."""
    x = input_seq[-1]
    h = hidden_state[0]
    c = cell_state[0]
    H = h.shape[-1]
    gates = (x @ params["w_ih"].T + h @ params["w_hh"].T
             + params["b_ih"] + params["b_hh"])
    i = jax.nn.sigmoid(gates[:, 0 * H:1 * H])
    f = jax.nn.sigmoid(gates[:, 1 * H:2 * H])
    g = jnp.tanh(gates[:, 2 * H:3 * H])
    o = jax.nn.sigmoid(gates[:, 3 * H:4 * H])
    c_new = f * c + i * g
    h_new = o * jnp.tanh(c_new)
    y = h_new @ params["w_fc"].T + params["b_fc"]
    return y[None]


if __name__ == "__main__":
    SEQ, BATCH, HIDDEN, OUT = 8, 8, 32, 16

    key = jax.random.PRNGKey(0)
    k_in, k_h, k_c, k_p = jax.random.split(key, 4)

    input_seq = jax.random.normal(k_in, (SEQ, BATCH, HIDDEN), jnp.float32)
    hidden_state = jax.random.normal(k_h, (1, BATCH, HIDDEN), jnp.float32)
    cell_state = jax.random.normal(k_c, (1, BATCH, HIDDEN), jnp.float32)

    params = init_params(k_p, HIDDEN, OUT)
    fused = fuse_params(params)          # one-time prep, outside the hot path

    fwd = jax.jit(decoder_forward)
    y = fwd(input_seq, hidden_state, cell_state, fused)
    jax.block_until_ready(y)
    assert y.shape == (1, BATCH, OUT)

    y_ref = _reference(input_seq, hidden_state, cell_state, params)
    max_err = float(jnp.max(jnp.abs(y - y_ref)))
    assert jnp.allclose(y, y_ref, atol=1e-3, rtol=1e-3), max_err

    print("KERNEL_OK")
</pallas_src>

<mosaic_0001>
module attributes {stable_mosaic.version = 11 : i64} {
  func.func @_decoder_kernel(%arg0: i32, %arg1: memref<1x8x32xf32, #tpu.memory_space<vmem>>, %arg2: memref<1x8x32xf32, #tpu.memory_space<vmem>>, %arg3: memref<1x8x32xf32, #tpu.memory_space<vmem>>, %arg4: memref<64x128xf32, #tpu.memory_space<vmem>>, %arg5: memref<1x128xf32, #tpu.memory_space<vmem>>, %arg6: memref<32x16xf32, #tpu.memory_space<vmem>>, %arg7: memref<1x16xf32, #tpu.memory_space<vmem>>, %arg8: memref<8x16xf32, #tpu.memory_space<vmem>>) attributes {dimension_semantics = [#tpu.dimension_semantics<arbitrary>], iteration_bounds = array<i64: 1>, scalar_prefetch = 0 : i64, scratch_operands = 0 : i64, tpu.core_type = #tpu.core_type<tc>, window_params = [{transform_indices = @transform_0, window_bounds = array<i64: 1, 8, 32>}, {pipeline_mode = #tpu.pipeline_mode<synchronous>, transform_indices = @transform_1, window_bounds = array<i64: 1, 8, 32>}, {pipeline_mode = #tpu.pipeline_mode<synchronous>, transform_indices = @transform_2, window_bounds = array<i64: 1, 8, 32>}, {pipeline_mode = #tpu.pipeline_mode<synchronous>, transform_indices = @transform_3, window_bounds = array<i64: 64, 128>}, {pipeline_mode = #tpu.pipeline_mode<synchronous>, transform_indices = @transform_4, window_bounds = array<i64: 1, 128>}, {pipeline_mode = #tpu.pipeline_mode<synchronous>, transform_indices = @transform_5, window_bounds = array<i64: 32, 16>}, {pipeline_mode = #tpu.pipeline_mode<synchronous>, transform_indices = @transform_6, window_bounds = array<i64: 1, 16>}, {pipeline_mode = #tpu.pipeline_mode<synchronous>, transform_indices = @transform_7, window_bounds = array<i64: 8, 16>}]} {
    %c0 = arith.constant 0 : index
    %c0_0 = arith.constant 0 : index
    %c0_1 = arith.constant 0 : index
    %0 = vector.load %arg1[%c0, %c0_0, %c0_1] : memref<1x8x32xf32, #tpu.memory_space<vmem>>, vector<1x8x32xf32>
    %1 = vector.shape_cast %0 : vector<1x8x32xf32> to vector<8x32xf32>
    %c0_2 = arith.constant 0 : index
    %c0_3 = arith.constant 0 : index
    %c0_4 = arith.constant 0 : index
    %2 = vector.load %arg2[%c0_2, %c0_3, %c0_4] : memref<1x8x32xf32, #tpu.memory_space<vmem>>, vector<1x8x32xf32>
    %3 = vector.shape_cast %2 : vector<1x8x32xf32> to vector<8x32xf32>
    %c0_5 = arith.constant 0 : index
    %c0_6 = arith.constant 0 : index
    %c0_7 = arith.constant 0 : index
    %4 = vector.load %arg3[%c0_5, %c0_6, %c0_7] : memref<1x8x32xf32, #tpu.memory_space<vmem>>, vector<1x8x32xf32>
    %5 = vector.shape_cast %4 : vector<1x8x32xf32> to vector<8x32xf32>
    %6 = tpu.concatenate %1, %3 in 1 : vector<8x32xf32>, vector<8x32xf32> -> vector<8x64xf32>
    %c0_8 = arith.constant 0 : index
    %c0_9 = arith.constant 0 : index
    %7 = vector.load %arg4[%c0_8, %c0_9] : memref<64x128xf32, #tpu.memory_space<vmem>>, vector<64x128xf32>
    %cst = arith.constant dense<0.000000e+00> : vector<8x128xf32>
    %8 = tpu.matmul %6, %7, %cst {dimension_numbers = #tpu.dot_dimension_numbers<[1], [0], [0], [1], [0, 0, 1, 1], [], []>} : vector<8x64xf32>, vector<64x128xf32>, vector<8x128xf32> -> vector<8x128xf32>
    %c0_10 = arith.constant 0 : index
    %c0_11 = arith.constant 0 : index
    %9 = vector.load %arg5[%c0_10, %c0_11] : memref<1x128xf32, #tpu.memory_space<vmem>>, vector<1x128xf32>
    %10 = vector.broadcast %9 : vector<1x128xf32> to vector<8x128xf32>
    %11 = arith.addf %8, %10 : vector<8x128xf32>
    %12 = vector.extract_strided_slice %11 {offsets = [0, 0], sizes = [8, 32], strides = [1, 1]} : vector<8x128xf32> to vector<8x32xf32>
    %13 = arith.negf %12 : vector<8x32xf32>
    %14 = math.exp %13 : vector<8x32xf32>
    %cst_12 = arith.constant 1.000000e+00 : f32
    %15 = vector.broadcast %cst_12 : f32 to vector<8x32xf32>
    %16 = arith.addf %15, %14 : vector<8x32xf32>
    %17 = arith.divf %15, %16 : vector<8x32xf32>
    %18 = vector.extract_strided_slice %11 {offsets = [0, 32], sizes = [8, 32], strides = [1, 1]} : vector<8x128xf32> to vector<8x32xf32>
    %19 = arith.negf %18 : vector<8x32xf32>
    %20 = math.exp %19 : vector<8x32xf32>
    %cst_13 = arith.constant 1.000000e+00 : f32
    %21 = vector.broadcast %cst_13 : f32 to vector<8x32xf32>
    %22 = arith.addf %21, %20 : vector<8x32xf32>
    %23 = arith.divf %21, %22 : vector<8x32xf32>
    %24 = vector.extract_strided_slice %11 {offsets = [0, 64], sizes = [8, 32], strides = [1, 1]} : vector<8x128xf32> to vector<8x32xf32>
    %25 = math.tanh %24 : vector<8x32xf32>
    %26 = vector.extract_strided_slice %11 {offsets = [0, 96], sizes = [8, 32], strides = [1, 1]} : vector<8x128xf32> to vector<8x32xf32>
    %27 = arith.negf %26 : vector<8x32xf32>
    %28 = math.exp %27 : vector<8x32xf32>
    %cst_14 = arith.constant 1.000000e+00 : f32
    %29 = vector.broadcast %cst_14 : f32 to vector<8x32xf32>
    %30 = arith.addf %29, %28 : vector<8x32xf32>
    %31 = arith.divf %29, %30 : vector<8x32xf32>
    %32 = arith.mulf %23, %5 : vector<8x32xf32>
    %33 = arith.mulf %17, %25 : vector<8x32xf32>
    %34 = arith.addf %32, %33 : vector<8x32xf32>
    %35 = math.tanh %34 : vector<8x32xf32>
    %36 = arith.mulf %31, %35 : vector<8x32xf32>
    %c0_15 = arith.constant 0 : index
    %c0_16 = arith.constant 0 : index
    %37 = vector.load %arg6[%c0_15, %c0_16] : memref<32x16xf32, #tpu.memory_space<vmem>>, vector<32x16xf32>
    %cst_17 = arith.constant dense<0.000000e+00> : vector<8x16xf32>
    %38 = tpu.matmul %36, %37, %cst_17 {dimension_numbers = #tpu.dot_dimension_numbers<[1], [0], [0], [1], [0, 0, 1, 1], [], []>} : vector<8x32xf32>, vector<32x16xf32>, vector<8x16xf32> -> vector<8x16xf32>
    %c0_18 = arith.constant 0 : index
    %c0_19 = arith.constant 0 : index
    %39 = vector.load %arg7[%c0_18, %c0_19] : memref<1x16xf32, #tpu.memory_space<vmem>>, vector<1x16xf32>
    %40 = vector.broadcast %39 : vector<1x16xf32> to vector<8x16xf32>
    %41 = arith.addf %38, %40 : vector<8x16xf32>
    %c0_20 = arith.constant 0 : index
    %c0_21 = arith.constant 0 : index
    %42 = vector.load %arg8[%c0_20, %c0_21] : memref<8x16xf32, #tpu.memory_space<vmem>>, vector<8x16xf32>
    tpu.vector_store %arg8[%c0_20, %c0_21], %41 {strides = array<i32>} : memref<8x16xf32, #tpu.memory_space<vmem>>, vector<8x16xf32>,
    return
  }
  func.func @transform_0(%arg0: i32) -> (i32, i32, i32) {
    %c7_i32 = arith.constant 7 : i32
    %c0_i32 = arith.constant 0 : i32
    %c0_i32_0 = arith.constant 0 : i32
    %c0_i32_1 = arith.constant 0 : i32
    return %c7_i32, %c0_i32, %c0_i32_0 : i32, i32, i32
  }
  func.func @transform_1(%arg0: i32) -> (i32, i32, i32) {
    %c0_i32 = arith.constant 0 : i32
    %c0_i32_0 = arith.constant 0 : i32
    %c0_i32_1 = arith.constant 0 : i32
    %c0_i32_2 = arith.constant 0 : i32
    return %c0_i32, %c0_i32_0, %c0_i32_1 : i32, i32, i32
  }
  func.func @transform_2(%arg0: i32) -> (i32, i32, i32) {
    %c0_i32 = arith.constant 0 : i32
    %c0_i32_0 = arith.constant 0 : i32
    %c0_i32_1 = arith.constant 0 : i32
    %c0_i32_2 = arith.constant 0 : i32
    return %c0_i32, %c0_i32_0, %c0_i32_1 : i32, i32, i32
  }
  func.func @transform_3(%arg0: i32) -> (i32, i32) {
    %c0_i32 = arith.constant 0 : i32
    %c0_i32_0 = arith.constant 0 : i32
    %c0_i32_1 = arith.constant 0 : i32
    return %c0_i32, %c0_i32_0 : i32, i32
  }
  func.func @transform_4(%arg0: i32) -> (i32, i32) {
    %c0_i32 = arith.constant 0 : i32
    %c0_i32_0 = arith.constant 0 : i32
    %c0_i32_1 = arith.constant 0 : i32
    return %c0_i32, %c0_i32_0 : i32, i32
  }
  func.func @transform_5(%arg0: i32) -> (i32, i32) {
    %c0_i32 = arith.constant 0 : i32
    %c0_i32_0 = arith.constant 0 : i32
    %c0_i32_1 = arith.constant 0 : i32
    return %c0_i32, %c0_i32_0 : i32, i32
  }
  func.func @transform_6(%arg0: i32) -> (i32, i32) {
    %c0_i32 = arith.constant 0 : i32
    %c0_i32_0 = arith.constant 0 : i32
    %c0_i32_1 = arith.constant 0 : i32
    return %c0_i32, %c0_i32_0 : i32, i32
  }
  func.func @transform_7(%arg0: i32) -> (i32, i32) {
    %c0_i32 = arith.constant 0 : i32
    %c0_i32_0 = arith.constant 0 : i32
    %c0_i32_1 = arith.constant 0 : i32
    return %c0_i32, %c0_i32_0 : i32, i32
  }
}

</mosaic_0001>

<bundles_post_ra>
// kernel: decoder_forward.1
= control target key start
LH: loop header
LB: loop body
LE: loop exit
PB: predicated region body
PF: predicated region fallthrough
CT: control target
= control target key end

     0   :  { %12 = vsyncpa [#allocation3], 0  ;;  %s628_s0 = inlined_call_operand.hbm [shape: f32[8,8,32], index: 0, kind: input, shape index: {}]   ;;  %s629_s1 = inlined_call_operand.hbm [shape: f32[1,8,32], index: 1, kind: input, shape index: {}]   ;;  %s630_s2 = inlined_call_operand.hbm [shape: f32[1,8,32], index: 2, kind: input, shape index: {}]   ;;  %s631_s3 = inlined_call_operand.vmem [shape: f32[64,128], index: 3, kind: input, shape index: {}]   ;;  %s632_s4 = inlined_call_operand.vmem [shape: f32[1,128], index: 4, kind: input, shape index: {}]   ;;  %s633_s5 = inlined_call_operand.vmem [shape: f32[32,16], index: 5, kind: input, shape index: {}]   ;;  %s634_s6 = inlined_call_operand.vmem [shape: f32[1,16], index: 6, kind: input, shape index: {}]   ;;  %s635_s7 = inlined_call_operand.hbm [shape: f32[8,16], index: 7, kind: output, shape index: {}]  }
   0x1   :  { %13 = vsyncpa [#allocation6], 0 }
   0x2   :  { %14 = vsyncpa [#allocation4], 0  ;;  %s526_s26 = scalar_lea.hbm %s628_s0, 896  ;;  %s474_s27 = smov [#allocation5]  }
   0x3   :  { %s32_s28 = sshll.u32 %s474_s27, 4  ;;  %s475_s29 = smov [#allocation2]   ;;  %s33_s28 = int_to_ptr.vmem [resolvable:$true] %s32_s28 }
   0x4   :  { %s22_s30 = sshll.u32 %s475_s29, 4  ;;  %s377_s10 = scalar_lea.hbm %s629_s1, 128  ;;  %s23_s30 = int_to_ptr.vmem [resolvable:$true] %s22_s30 }
   0x5   :  { %p378_p0 = scmp.ne.s32.totalorder %s629_s1, %s377_s10  ;;  %p381_p1 = scmp.lt.u32.totalorder %s377_s10, %s629_s1 }
   0x7   :  { %p383_p2 = pnand %p381_p1, %p378_p0 }
   0x9   :  { %386 = shalt.err (!%p383_p2)
}
   0xa   :  { %s387_s15 = scalar_lea.vmem %s33_s28, 128  ;;  %p392_p4 = scmp.lt.s32.totalorder %s33_s28, %s33_s28 }
   0xb   :  { %p388_p3 = scmp.ne.s32.totalorder %s33_s28, %s387_s15  ;;  %p393_p5 = scmp.lt.s32.totalorder %s387_s15, %s387_s15 }
   0xd   :  { %p394_p6 = por %p393_p5, %p392_p4 }
   0xf   :  { %p395_p7 = pnand %p394_p6, %p388_p3 }
  0x11   :  { %398 = shalt.err (!%p395_p7)
}
  0x12   :  { %35 = dma.hbm_to_vmem [thread:$0]  %s629_s1, 128, %s33_s28, [#allocation6]  }
  0x13   :  { %s423_s20 = scalar_lea.hbm %s628_s0, 1024  ;;  %p402_p9 = scmp.lt.u32.totalorder %s526_s26, %s628_s0 }
  0x14   :  { %p400_p8 = scmp.ne.s32.totalorder %s526_s26, %s423_s20  ;;  %p403_p10 = scmp.lt.u32.totalorder %s423_s20, %s423_s20 }
  0x15   :  { %p405_p12 = scmp.lt.u32.totalorder %s423_s20, %s526_s26 }
  0x16   :  { %p404_p11 = por %p403_p10, %p402_p9 }
  0x18   :  { %p406_p13 = por %p405_p12, %p404_p11 }
  0x1a   :  { %p407_p0 = pnand %p406_p13, %p400_p8 }
  0x1c   :  { %410 = shalt.err (!%p407_p0)
}
  0x1d   :  { %s411_s23 = scalar_lea.vmem %s23_s30, 128  ;;  %p416_p2 = scmp.lt.s32.totalorder %s23_s30, %s23_s30 }
  0x1e   :  { %p412_p1 = scmp.ne.s32.totalorder %s23_s30, %s411_s23  ;;  %p417_p3 = scmp.lt.s32.totalorder %s411_s23, %s411_s23 }
  0x20   :  { %p418_p4 = por %p417_p3, %p416_p2 }
  0x22   :  { %p419_p5 = pnand %p418_p4, %p412_p1 }
  0x24   :  { %422 = shalt.err (!%p419_p5)
}
  0x25   :  { %25 = dma.hbm_to_vmem [thread:$0]  %s526_s26, 128, %s23_s30, [#allocation3]  }
  0x26   :  { %s476_s1 = smov [#allocation7]   ;;  %s424_s27 = scalar_lea.hbm %s630_s2, 128 }
  0x27   :  { %s42_s24 = sshll.u32 %s476_s1, 4  ;;  %p425_p6 = scmp.ne.s32.totalorder %s630_s2, %s424_s27  ;;  %s43_s24 = int_to_ptr.vmem [resolvable:$true] %s42_s24 }
  0x28   :  { %p428_p7 = scmp.lt.u32.totalorder %s424_s27, %s630_s2 }
  0x2a   :  { %p430_p8 = pnand %p428_p7, %p425_p6 }
  0x2c   :  { %433 = shalt.err (!%p430_p8)
}
  0x2d   :  { %s434_s10 = scalar_lea.vmem %s43_s24, 128  ;;  %p439_p10 = scmp.lt.s32.totalorder %s43_s24, %s43_s24 }
  0x2e   :  { %p435_p9 = scmp.ne.s32.totalorder %s43_s24, %s434_s10  ;;  %p440_p11 = scmp.lt.s32.totalorder %s434_s10, %s434_s10 }
  0x30   :  { %p441_p12 = por %p440_p11, %p439_p10 }
  0x32   :  { %p442_p13 = pnand %p441_p12, %p435_p9 }
  0x34   :  { %445 = shalt.err (!%p442_p13)
}
  0x35   :  { %45 = dma.hbm_to_vmem [thread:$0]  %s630_s2, 128, %s43_s24, [#allocation6]  }
  0x36   :  { %468 = dma.done.wait [#allocation3], 128  }
  0x37   :  { %469 = vsyncadd [#allocation3], 4294967168 }
  0x38   :  { %470 = dma.done.wait [#allocation6], 256  }
  0x39   :  { %471 = vsyncadd [#allocation6], 4294967040  ;;  %v477_v0 = vmov 0.0|0.0   ;;  %vm478_vm0 = vmmov 0   ;;  %v479_v1 = vmov 0.0   ;;  %v64_v2 = vld [vmem:[#allocation5] sm:$0xff] }
  0x3a   :  { %342 = vmatprep.subr.bf16.mxu0 %v477_v0  ;;  %354 = vmatprep.subr.bf16.mxu1 %v477_v0  ;;  %v72_v3 = vld [vmem:[%s631_s3] sm:$0xff]  ;;  %v73_v4 = vld [vmem:[%s631_s3 + $0x8] sm:$0xff]  ;;  %s480_s14 = smov 32   ;;  %v74_v6 = vld [vmem:[%s631_s3 + $0x10] sm:$0xff]  ;;  %vm70_vm1 = vcmask 261120   ;;  %vm87_vm2 = vcmask 523264  }
  0x3b   :  { %328 = vmatprep.mubr.msk.f32.mxu0 %vm478_vm0, %v479_v1  ;;  %339 = vmatprep.mubr.msk.f32.mxu1 %vm478_vm0, %v479_v1  ;;  %v343_v5 = vpack.c.bf16 %v73_v4, %v72_v3  ;;  %v75_v7 = vld [vmem:[%s631_s3 + $0x18] sm:$0xff]  ;;  %v65_v9 = vld [vmem:[#allocation7] sm:$0xff]  ;;  %v76_v10 = vld [vmem:[%s631_s3 + $0x20] sm:$0xff]  ;;  %s482_s13 = smov [#allocation8]   ;;  %vm275_vm3 = vcmask 130048  }
  0x3c   :  { %67 = vrot.lane.b32.xlu0 %v64_v2, %s480_s14  ;;  %v346_v8 = vpack.c.bf16 %v75_v7, %v74_v6  ;;  %v77_v11 = vld [vmem:[%s631_s3 + $0x28] sm:$0xff]  ;;  %169 = vrot.lane.b32.xlu1 %v65_v9, %s480_s14  ;;  %v78_v13 = vld [vmem:[%s631_s3 + $0x30] sm:$0xff]  ;;  %v63_v16 = vld [vmem:[#allocation2] sm:$0xff] }
  0x3d   :  { %344 = vmatpush3.bf16.msra.mxu0 %v343_v5  ;;  %v349_v12 = vpack.c.bf16 %v77_v11, %v76_v10  ;;  %v79_v14 = vld [vmem:[%s631_s3 + $0x38] sm:$0xff]  ;;  %v293_v19 = vld [vmem:[%s632_s4] ss:$0 sm:$0xff]  ;;  %s481_s3 = smov 64   ;;  %v190_v35 = vld [vmem:[%s633_s5 + $0x8] sm:$0xff] }
  0x3e   :  { %345 = vmatprep.subr.bf16.mxu0 %v477_v0  ;;  %v352_v15 = vpack.c.bf16 %v79_v14, %v78_v13  ;;  %v189_v34 = vld [vmem:[%s633_s5] sm:$0xff]  ;;  %v191_v36 = vld [vmem:[%s633_s5 + $0x10] sm:$0xff]  ;;  %v192_v38 = vld [vmem:[%s633_s5 + $0x18] sm:$0xff]  ;;  %s283_s5 = sshll.u32 %s482_s13, 4  ;;  %s284_s5 = int_to_ptr.vmem [resolvable:$true] %s283_s5 }
  0x3f   :  { %v355_v37 = vpack.c.bf16 %v190_v35, %v189_v34  ;;  %v358_v39 = vpack.c.bf16 %v192_v38, %v191_v36  ;;  %v296_v44 = vld [vmem:[%s634_s6] ss:$0 sm:$0xff]  ;;  %s446_s2 = scalar_lea.vmem %s284_s5, 128  ;;  %p451_p1 = scmp.lt.s32.totalorder %s284_s5, %s284_s5 }
  0x40   :  { %p447_p0 = scmp.ne.s32.totalorder %s284_s5, %s446_s2  ;;  %p452_p2 = scmp.lt.s32.totalorder %s446_s2, %s446_s2 }
  0x41   :  { %347 = vmatpush3.bf16.msra.mxu0 %v346_v8  ;;  %356 = vmatpush3.bf16.msra.mxu1 %v355_v37 }
  0x42   :  { %348 = vmatprep.subr.bf16.mxu0 %v477_v0  ;;  %357 = vmatprep.subr.bf16.mxu1 %v477_v0  ;;  %p453_p3 = por %p452_p2, %p451_p1 }
  0x44   :  { %p454_p4 = pnand %p453_p3, %p447_p0 }
  0x45   :  { %350 = vmatpush3.bf16.msra.mxu0 %v349_v12  ;;  %359 = vmatpush3.bf16.msra.mxu1 %v358_v39 }
  0x46   :  { %351 = vmatprep.subr.bf16.mxu0 %v477_v0 }
  0x49   :  { %353 = vmatpush3.bf16.msra.mxu0 %v352_v15 }
  0xae   :  { %v68_v17 = vpop.permute.xlu0 %67  ;;  %v170_v30 = vpop.permute.xlu1 %169 }
  0xaf   :  { %v71_v18 = vsel %vm70_vm1, %v63_v16, %v68_v17 }
  0xb0   :  { %329 = vmatmul.mubr.msk.f32.vlgmr.msra.gmra.mrb[0].mxu0 %vm87_vm2, %v71_v18 }
 0x183   :  { %v157_v20 = vpop.f32.mrb[0].mxu0 }
 0x184   :  { %v158_v21 = vadd.f32 %v293_v19, %v157_v20  ;;  %v330_v22 = vpop.f32.mrb[1].mxu0 }
 0x186   :  { %369 = vtanh.f32 %v158_v21  ;;  %v295_v24 = vmul.f32 -1.442695, %v158_v21 }
 0x188   :  { %371 = vpow2.f32 %v295_v24 }
 0x190   :  { %v370_v23 = vpop.eup %369 }
 0x191   :  { %174 = vrot.lane.b32.xlu0 %v370_v23, %s481_s3 }
 0x192   :  { %v372_v25 = vpop.eup %371 }
 0x193   :  { %v164_v26 = vadd.f32 1.0, %v372_v25 }
 0x195   :  { %373 = vrcp.f32 %v164_v26 }
 0x19f   :  { %v374_v27 = vpop.eup %373 }
 0x1a0   :  { %v172_v31 = vmul.f32 %v374_v27, %v170_v30 }
 0x203   :  { %v175_v28 = vpop.permute.xlu0 %174 }
 0x204   :  { %v177_v29 = vmul.f32 %v374_v27, %v175_v28 }
 0x206   :  { %179 = vrot.lane.b32.xlu1 %v177_v29, %s480_s14 }
 0x278   :  { %v180_v32 = vpop.permute.xlu1 %179 }
 0x279   :  { %v182_v33 = vadd.f32 %v180_v32, %v172_v31 }
 0x27b   :  { %375 = vtanh.f32 %v182_v33 }
 0x285   :  { %v376_v40 = vpop.eup %375 }
 0x286   :  { %185 = vrot.lane.b32.xlu0 %v376_v40, %s481_s3 }
 0x2f8   :  { %v186_v41 = vpop.permute.xlu0 %185 }
 0x2f9   :  { %v188_v42 = vmul.f32 %v374_v27, %v186_v41 }
 0x2fb   :  { %201 = vrot.lane.b32.xlu1 %v188_v42, %s480_s14 }
 0x36d   :  { %v202_v43 = vpop.permute.xlu1 %201 }
 0x36e   :  { %340 = vmatmul.mubr.msk.f32.vlgmr.msra.gmra.mrb[0].mxu1 %vm70_vm1, %v202_v43 }
 0x441   :  { %v271_v45 = vpop.f32.mrb[0].mxu1 }
 0x442   :  { %v272_v46 = vadd.f32 %v296_v44, %v271_v45  ;;  %v341_v47 = vpop.f32.mrb[1].mxu1 }
 0x444   :  { %276 = vst.msk [vmem:[#allocation8] sm:$0xff] %vm275_vm3, %v272_v46 }
 0x445   :  { %457 = shalt.err (!%p454_p4)
}
 0x446   :  { %s458_s16 = scalar_lea.hbm %s635_s7, 128 }
 0x447   :  { %p459_p5 = scmp.ne.s32.totalorder %s635_s7, %s458_s16  ;;  %p462_p6 = scmp.lt.u32.totalorder %s458_s16, %s635_s7 }
 0x449   :  { %p464_p7 = pnand %p462_p6, %p459_p5 }
 0x44b   :  { %467 = shalt.err (!%p464_p7)
}
 0x44c   :  { %286 = dma.vmem_to_hbm [thread:$0]  %s284_s5, 128, %s635_s7, [#allocation4]  }
 0x44d   :  { %472 = dma.done.wait [#allocation4], 128  }
 0x44e   :  { %473 = vsyncadd [#allocation4], 4294967168 }
 0x44f   :  { %290 = vsyncpa [#allocation3], 1 }
 0x450   :  { %291 = vsyncpa [#allocation6], 1 }
 0x451   :  { %292 = vsyncpa [#allocation4], 1 }

</bundles_post_ra>
